<compile_context>
chip_gen: v7x
topology: tpu7x:2x2x1
jax: 0.10.0
libtpu: 0.0.40
codegen_flags: <defaults>
</compile_context>

<pallas_src>
import functools

import jax
import jax.numpy as jnp
from jax.experimental import pallas as pl
from jax.experimental.pallas import tpu as pltpu

N_LAYERS = 6
PAD = 128  # lane-dense feature padding


def _round_up(x, m):
    return ((x + m - 1) // m) * m


def _mlp_kernel(x_ref, w_ref, b_ref, o_ref):
    # x_ref: (tb, PAD) f32   w_ref: (6, PAD, PAD) bf16   b_ref: (6, 1, PAD) f32
    h = x_ref[...]
    for layer in range(N_LAYERS):          # static unroll: 6 MXU matmuls, one BB
        w = w_ref[layer]                   # (PAD, PAD) bf16
        b = b_ref[layer]                   # (1, PAD)   f32
        h = jnp.dot(h.astype(jnp.bfloat16), w,
                    preferred_element_type=jnp.float32) + b
        if layer < N_LAYERS - 1:
            h = jnp.maximum(h, 0.0)        # ReLU in f32 (cheap on all chips)
    o_ref[...] = h


def pack_params(params):
    """params: list of (W (in,out) f32, b (1,out) f32). Returns zero-padded packed arrays.

    Padded rows/cols of W and padded entries of b are exactly zero, so padded lanes
    stay zero through every layer.
    """
    assert len(params) == N_LAYERS
    w_packed = jnp.zeros((N_LAYERS, PAD, PAD), jnp.bfloat16)
    b_packed = jnp.zeros((N_LAYERS, 1, PAD), jnp.float32)
    for i, (w, b) in enumerate(params):
        kin, kout = w.shape
        w_packed = w_packed.at[i, :kin, :kout].set(w.astype(jnp.bfloat16))
        b_packed = b_packed.at[i, 0, :kout].set(b.reshape(-1).astype(jnp.float32))
    return w_packed, b_packed


@functools.partial(jax.jit, static_argnames=("out_dim",))
def feedforward_pallas(x, w_packed, b_packed, out_dim):
    """x: (B, input_size) f32. Returns (B, out_dim) f32."""
    B, d_in = x.shape

    # Batch tiling: big lane-dense tiles when batch is large, minimal padding when small.
    tb = 256 if B >= 256 else _round_up(B, 8)
    padded_B = _round_up(B, tb)

    x_pad = jnp.zeros((padded_B, PAD), jnp.float32).at[:B, :d_in].set(x)

    out_pad = pl.pallas_call(
        _mlp_kernel,
        out_shape=jax.ShapeDtypeStruct((padded_B, PAD), jnp.float32),
        grid=(padded_B // tb,),
        in_specs=[
            pl.BlockSpec((tb, PAD), lambda i: (i, 0)),             # activations: tiled
            pl.BlockSpec(w_packed.shape, lambda i: (0, 0, 0)),     # weights: resident
            pl.BlockSpec(b_packed.shape, lambda i: (0, 0, 0)),     # biases:  resident
        ],
        out_specs=pl.BlockSpec((tb, PAD), lambda i: (i, 0)),
        compiler_params=pltpu.CompilerParams(
            dimension_semantics=("parallel",),
            vmem_limit_bytes=4 << 20,
        ),
    )(x_pad, w_packed, b_packed)

    return out_pad[:B, :out_dim]


def feedforward_ref(x, params):
    """Pure-JAX reference mirroring the kernel's bf16-matmul / f32-accumulate path."""
    h = x
    n = len(params)
    for i, (w, b) in enumerate(params):
        h = jnp.dot(h.astype(jnp.bfloat16), w.astype(jnp.bfloat16),
                    preferred_element_type=jnp.float32) + b
        if i < n - 1:
            h = jnp.maximum(h, 0.0)
    return h


def make_params(key, dims):
    """dims = [input_size, h1, h2, h3, h4, h5, outputs]; deterministic torch-like init."""
    params = []
    for i in range(len(dims) - 1):
        kin, kout = dims[i], dims[i + 1]
        key, kw, kb = jax.random.split(key, 3)
        bound = 1.0 / jnp.sqrt(kin)
        # weight stored transposed relative to torch.nn.Linear: shape (in, out)
        w = jax.random.uniform(kw, (kin, kout), jnp.float32, -bound, bound)
        b = jax.random.uniform(kb, (1, kout), jnp.float32, -bound, bound)
        params.append((w, b))
    return params


if __name__ == "__main__":
    key = jax.random.PRNGKey(0)
    # Feedforward(input_size=32, hidden=64, 64, 64, 64, 64, outputs=16)
    dims = [32, 64, 64, 64, 64, 64, 16]
    batch = 8

    key, kx = jax.random.split(key)
    x = jax.random.normal(kx, (batch, dims[0]), jnp.float32)
    params = make_params(key, dims)

    w_packed, b_packed = pack_params(params)

    out = feedforward_pallas(x, w_packed, b_packed, out_dim=dims[-1])
    out = jax.block_until_ready(out)

    ref = feedforward_ref(x, params)
    assert out.shape == (batch, dims[-1])
    assert jnp.allclose(out, ref, atol=2e-3, rtol=2e-3), "mismatch vs JAX reference"

    print("KERNEL_OK")
</pallas_src>

<mosaic_0001>
module attributes {stable_mosaic.version = 11 : i64} {
  func.func @_mlp_kernel(%arg0: i32, %arg1: memref<8x128xf32, #tpu.memory_space<vmem>>, %arg2: memref<6x128x128xbf16, #tpu.memory_space<vmem>>, %arg3: memref<6x1x128xf32, #tpu.memory_space<vmem>>, %arg4: memref<8x128xf32, #tpu.memory_space<vmem>>) attributes {dimension_semantics = [#tpu.dimension_semantics<parallel>], iteration_bounds = array<i64: 1>, scalar_prefetch = 0 : i64, scratch_operands = 0 : i64, tpu.core_type = #tpu.core_type<tc>, window_params = [{transform_indices = @transform_0, window_bounds = array<i64: 8, 128>}, {pipeline_mode = #tpu.pipeline_mode<synchronous>, transform_indices = @transform_1, window_bounds = array<i64: 6, 128, 128>}, {pipeline_mode = #tpu.pipeline_mode<synchronous>, transform_indices = @transform_2, window_bounds = array<i64: 6, 1, 128>}, {transform_indices = @transform_3, window_bounds = array<i64: 8, 128>}]} {
    %c0 = arith.constant 0 : index
    %c0_0 = arith.constant 0 : index
    %0 = vector.load %arg1[%c0, %c0_0] : memref<8x128xf32, #tpu.memory_space<vmem>>, vector<8x128xf32>
    %c0_1 = arith.constant 0 : index
    %c0_2 = arith.constant 0 : index
    %c0_3 = arith.constant 0 : index
    %1 = vector.load %arg2[%c0_1, %c0_2, %c0_3] : memref<6x128x128xbf16, #tpu.memory_space<vmem>>, vector<1x128x128xbf16>
    %2 = vector.shape_cast %1 : vector<1x128x128xbf16> to vector<128x128xbf16>
    %c0_4 = arith.constant 0 : index
    %c0_5 = arith.constant 0 : index
    %c0_6 = arith.constant 0 : index
    %3 = vector.load %arg3[%c0_4, %c0_5, %c0_6] : memref<6x1x128xf32, #tpu.memory_space<vmem>>, vector<1x1x128xf32>
    %4 = vector.shape_cast %3 : vector<1x1x128xf32> to vector<1x128xf32>
    %5 = arith.truncf %0 : vector<8x128xf32> to vector<8x128xbf16>
    %cst = arith.constant dense<0.000000e+00> : vector<8x128xf32>
    %6 = tpu.matmul %5, %2, %cst {dimension_numbers = #tpu.dot_dimension_numbers<[1], [0], [0], [1], [0, 0, 1, 1], [], []>} : vector<8x128xbf16>, vector<128x128xbf16>, vector<8x128xf32> -> vector<8x128xf32>
    %7 = vector.broadcast %4 : vector<1x128xf32> to vector<8x128xf32>
    %8 = arith.addf %6, %7 : vector<8x128xf32>
    %cst_7 = arith.constant 0.000000e+00 : f32
    %9 = vector.broadcast %cst_7 : f32 to vector<8x128xf32>
    %10 = arith.maximumf %8, %9 : vector<8x128xf32>
    %c1 = arith.constant 1 : index
    %c0_8 = arith.constant 0 : index
    %c0_9 = arith.constant 0 : index
    %11 = vector.load %arg2[%c1, %c0_8, %c0_9] : memref<6x128x128xbf16, #tpu.memory_space<vmem>>, vector<1x128x128xbf16>
    %12 = vector.shape_cast %11 : vector<1x128x128xbf16> to vector<128x128xbf16>
    %c1_10 = arith.constant 1 : index
    %c0_11 = arith.constant 0 : index
    %c0_12 = arith.constant 0 : index
    %13 = vector.load %arg3[%c1_10, %c0_11, %c0_12] : memref<6x1x128xf32, #tpu.memory_space<vmem>>, vector<1x1x128xf32>
    %14 = vector.shape_cast %13 : vector<1x1x128xf32> to vector<1x128xf32>
    %15 = arith.truncf %10 : vector<8x128xf32> to vector<8x128xbf16>
    %cst_13 = arith.constant dense<0.000000e+00> : vector<8x128xf32>
    %16 = tpu.matmul %15, %12, %cst_13 {dimension_numbers = #tpu.dot_dimension_numbers<[1], [0], [0], [1], [0, 0, 1, 1], [], []>} : vector<8x128xbf16>, vector<128x128xbf16>, vector<8x128xf32> -> vector<8x128xf32>
    %17 = vector.broadcast %14 : vector<1x128xf32> to vector<8x128xf32>
    %18 = arith.addf %16, %17 : vector<8x128xf32>
    %cst_14 = arith.constant 0.000000e+00 : f32
    %19 = vector.broadcast %cst_14 : f32 to vector<8x128xf32>
    %20 = arith.maximumf %18, %19 : vector<8x128xf32>
    %c2 = arith.constant 2 : index
    %c0_15 = arith.constant 0 : index
    %c0_16 = arith.constant 0 : index
    %21 = vector.load %arg2[%c2, %c0_15, %c0_16] : memref<6x128x128xbf16, #tpu.memory_space<vmem>>, vector<1x128x128xbf16>
    %22 = vector.shape_cast %21 : vector<1x128x128xbf16> to vector<128x128xbf16>
    %c2_17 = arith.constant 2 : index
    %c0_18 = arith.constant 0 : index
    %c0_19 = arith.constant 0 : index
    %23 = vector.load %arg3[%c2_17, %c0_18, %c0_19] : memref<6x1x128xf32, #tpu.memory_space<vmem>>, vector<1x1x128xf32>
    %24 = vector.shape_cast %23 : vector<1x1x128xf32> to vector<1x128xf32>
    %25 = arith.truncf %20 : vector<8x128xf32> to vector<8x128xbf16>
    %cst_20 = arith.constant dense<0.000000e+00> : vector<8x128xf32>
    %26 = tpu.matmul %25, %22, %cst_20 {dimension_numbers = #tpu.dot_dimension_numbers<[1], [0], [0], [1], [0, 0, 1, 1], [], []>} : vector<8x128xbf16>, vector<128x128xbf16>, vector<8x128xf32> -> vector<8x128xf32>
    %27 = vector.broadcast %24 : vector<1x128xf32> to vector<8x128xf32>
    %28 = arith.addf %26, %27 : vector<8x128xf32>
    %cst_21 = arith.constant 0.000000e+00 : f32
    %29 = vector.broadcast %cst_21 : f32 to vector<8x128xf32>
    %30 = arith.maximumf %28, %29 : vector<8x128xf32>
    %c3 = arith.constant 3 : index
    %c0_22 = arith.constant 0 : index
    %c0_23 = arith.constant 0 : index
    %31 = vector.load %arg2[%c3, %c0_22, %c0_23] : memref<6x128x128xbf16, #tpu.memory_space<vmem>>, vector<1x128x128xbf16>
    %32 = vector.shape_cast %31 : vector<1x128x128xbf16> to vector<128x128xbf16>
    %c3_24 = arith.constant 3 : index
    %c0_25 = arith.constant 0 : index
    %c0_26 = arith.constant 0 : index
    %33 = vector.load %arg3[%c3_24, %c0_25, %c0_26] : memref<6x1x128xf32, #tpu.memory_space<vmem>>, vector<1x1x128xf32>
    %34 = vector.shape_cast %33 : vector<1x1x128xf32> to vector<1x128xf32>
    %35 = arith.truncf %30 : vector<8x128xf32> to vector<8x128xbf16>
    %cst_27 = arith.constant dense<0.000000e+00> : vector<8x128xf32>
    %36 = tpu.matmul %35, %32, %cst_27 {dimension_numbers = #tpu.dot_dimension_numbers<[1], [0], [0], [1], [0, 0, 1, 1], [], []>} : vector<8x128xbf16>, vector<128x128xbf16>, vector<8x128xf32> -> vector<8x128xf32>
    %37 = vector.broadcast %34 : vector<1x128xf32> to vector<8x128xf32>
    %38 = arith.addf %36, %37 : vector<8x128xf32>
    %cst_28 = arith.constant 0.000000e+00 : f32
    %39 = vector.broadcast %cst_28 : f32 to vector<8x128xf32>
    %40 = arith.maximumf %38, %39 : vector<8x128xf32>
    %c4 = arith.constant 4 : index
    %c0_29 = arith.constant 0 : index
    %c0_30 = arith.constant 0 : index
    %41 = vector.load %arg2[%c4, %c0_29, %c0_30] : memref<6x128x128xbf16, #tpu.memory_space<vmem>>, vector<1x128x128xbf16>
    %42 = vector.shape_cast %41 : vector<1x128x128xbf16> to vector<128x128xbf16>
    %c4_31 = arith.constant 4 : index
    %c0_32 = arith.constant 0 : index
    %c0_33 = arith.constant 0 : index
    %43 = vector.load %arg3[%c4_31, %c0_32, %c0_33] : memref<6x1x128xf32, #tpu.memory_space<vmem>>, vector<1x1x128xf32>
    %44 = vector.shape_cast %43 : vector<1x1x128xf32> to vector<1x128xf32>
    %45 = arith.truncf %40 : vector<8x128xf32> to vector<8x128xbf16>
    %cst_34 = arith.constant dense<0.000000e+00> : vector<8x128xf32>
    %46 = tpu.matmul %45, %42, %cst_34 {dimension_numbers = #tpu.dot_dimension_numbers<[1], [0], [0], [1], [0, 0, 1, 1], [], []>} : vector<8x128xbf16>, vector<128x128xbf16>, vector<8x128xf32> -> vector<8x128xf32>
    %47 = vector.broadcast %44 : vector<1x128xf32> to vector<8x128xf32>
    %48 = arith.addf %46, %47 : vector<8x128xf32>
    %cst_35 = arith.constant 0.000000e+00 : f32
    %49 = vector.broadcast %cst_35 : f32 to vector<8x128xf32>
    %50 = arith.maximumf %48, %49 : vector<8x128xf32>
    %c5 = arith.constant 5 : index
    %c0_36 = arith.constant 0 : index
    %c0_37 = arith.constant 0 : index
    %51 = vector.load %arg2[%c5, %c0_36, %c0_37] : memref<6x128x128xbf16, #tpu.memory_space<vmem>>, vector<1x128x128xbf16>
    %52 = vector.shape_cast %51 : vector<1x128x128xbf16> to vector<128x128xbf16>
    %c5_38 = arith.constant 5 : index
    %c0_39 = arith.constant 0 : index
    %c0_40 = arith.constant 0 : index
    %53 = vector.load %arg3[%c5_38, %c0_39, %c0_40] : memref<6x1x128xf32, #tpu.memory_space<vmem>>, vector<1x1x128xf32>
    %54 = vector.shape_cast %53 : vector<1x1x128xf32> to vector<1x128xf32>
    %55 = arith.truncf %50 : vector<8x128xf32> to vector<8x128xbf16>
    %cst_41 = arith.constant dense<0.000000e+00> : vector<8x128xf32>
    %56 = tpu.matmul %55, %52, %cst_41 {dimension_numbers = #tpu.dot_dimension_numbers<[1], [0], [0], [1], [0, 0, 1, 1], [], []>} : vector<8x128xbf16>, vector<128x128xbf16>, vector<8x128xf32> -> vector<8x128xf32>
    %57 = vector.broadcast %54 : vector<1x128xf32> to vector<8x128xf32>
    %58 = arith.addf %56, %57 : vector<8x128xf32>
    %c0_42 = arith.constant 0 : index
    %c0_43 = arith.constant 0 : index
    %59 = vector.load %arg4[%c0_42, %c0_43] : memref<8x128xf32, #tpu.memory_space<vmem>>, vector<8x128xf32>
    tpu.vector_store %arg4[%c0_42, %c0_43], %58 {strides = array<i32>} : memref<8x128xf32, #tpu.memory_space<vmem>>, vector<8x128xf32>,
    return
  }
  func.func @transform_0(%arg0: i32) -> (i32, i32) {
    %c0_i32 = arith.constant 0 : i32
    %c0_i32_0 = arith.constant 0 : i32
    return %arg0, %c0_i32 : i32, i32
  }
  func.func @transform_1(%arg0: i32) -> (i32, i32, i32) {
    %c0_i32 = arith.constant 0 : i32
    %c0_i32_0 = arith.constant 0 : i32
    %c0_i32_1 = arith.constant 0 : i32
    %c0_i32_2 = arith.constant 0 : i32
    return %c0_i32, %c0_i32_0, %c0_i32_1 : i32, i32, i32
  }
  func.func @transform_2(%arg0: i32) -> (i32, i32, i32) {
    %c0_i32 = arith.constant 0 : i32
    %c0_i32_0 = arith.constant 0 : i32
    %c0_i32_1 = arith.constant 0 : i32
    %c0_i32_2 = arith.constant 0 : i32
    return %c0_i32, %c0_i32_0, %c0_i32_1 : i32, i32, i32
  }
  func.func @transform_3(%arg0: i32) -> (i32, i32) {
    %c0_i32 = arith.constant 0 : i32
    %c0_i32_0 = arith.constant 0 : i32
    return %arg0, %c0_i32 : i32, i32
  }
}

</mosaic_0001>

<bundles_post_ra>
// kernel: feedforward_pallas.1
= control target key start
LH: loop header
LB: loop body
LE: loop exit
PB: predicated region body
PF: predicated region fallthrough
CT: control target
= control target key end

     0   :  { %8 = vsyncpa [#allocation3], 0  ;;  %s1200_s0 = inlined_call_operand.vmem [shape: f32[8,128], index: 0, kind: input, shape index: {}]   ;;  %s1201_s1 = inlined_call_operand.hbm [shape: bf16[6,128,128], index: 1, kind: input, shape index: {}]   ;;  %s1202_s2 = inlined_call_operand.vmem [shape: f32[6,1,128], index: 2, kind: input, shape index: {}]   ;;  %s1203_s3 = inlined_call_operand.hbm [shape: f32[8,128], index: 3, kind: output, shape index: {}]  }
   0x1   :  { %9 = vsyncpa [#allocation4], 0  ;;  %s1069_s12 = smov [#allocation2]   ;;  %s1021_s16 = scalar_lea.hbm %s1201_s1, 6144 }
   0x2   :  { %s17_s13 = sshll.u32 %s1069_s12, 4  ;;  %p1022_p0 = scmp.ne.s32.totalorder %s1201_s1, %s1021_s16  ;;  %s18_s13 = int_to_ptr.vmem [resolvable:$true] %s17_s13 }
   0x3   :  { %p1025_p1 = scmp.lt.u32.totalorder %s1021_s16, %s1201_s1 }
   0x5   :  { %p1027_p2 = pnand %p1025_p1, %p1022_p0 }
   0x7   :  { %1030 = shalt.err (!%p1027_p2)
}
   0x8   :  { %s1031_s21 = scalar_lea.vmem %s18_s13, 6144  ;;  %p1036_p4 = scmp.lt.s32.totalorder %s18_s13, %s18_s13 }
   0x9   :  { %p1032_p3 = scmp.ne.s32.totalorder %s18_s13, %s1031_s21  ;;  %p1037_p5 = scmp.lt.s32.totalorder %s1031_s21, %s1031_s21 }
   0xb   :  { %p1038_p6 = por %p1037_p5, %p1036_p4 }
   0xd   :  { %p1039_p7 = pnand %p1038_p6, %p1032_p3 }
   0xf   :  { %1042 = shalt.err (!%p1039_p7)
}
  0x10   :  { %s1070_s22 = smov 64   ;;  %s1071_s23 = smov 4  }
  0x11   :  { %23 = dma.hbm_to_vmem [thread:$0]  %s1201_s1, 6144, %s18_s13, [#allocation3], %s1070_s22, %s1070_s22, %s1071_s23  }
  0x12   :  { %1065 = dma.done.wait [#allocation3], 6144  }
  0x13   :  { %1066 = vsyncadd [#allocation3], 4294961152  ;;  %v1072_v0 = vmov 0.0   ;;  %vm1073_vm0 = vmmov 0   ;;  %v973_v1 = vld [vmem:[#allocation2] sm:$0xff]   ;;  %v974_v2 = vld [vmem:[#allocation2 + $0x8] sm:$0xff]  }
  0x14   :  { %847 = vmatprep.subr.bf16.mxu0 %v1072_v0  ;;  %863 = vmatprep.mubr.msk.bf16.mxu0 %vm1073_vm0, %v1072_v0  ;;  %v975_v3 = vld [vmem:[#allocation2 + $0x10] sm:$0xff]   ;;  %v981_v4 = vld [vmem:[#allocation2 + $0x40] sm:$0xff]   ;;  %v976_v5 = vld [vmem:[#allocation2 + $0x18] sm:$0xff]   ;;  %s1074_s11 = smov [#allocation5]  }
  0x15   :  { %867 = vmatprep.subr.bf16.mxu1 %v1072_v0  ;;  %883 = vmatprep.mubr.msk.bf16.mxu1 %vm1073_vm0, %v1072_v0  ;;  %v982_v6 = vld [vmem:[#allocation2 + $0x48] sm:$0xff]   ;;  %v977_v7 = vld [vmem:[#allocation2 + $0x20] sm:$0xff]   ;;  %v983_v8 = vld [vmem:[#allocation2 + $0x50] sm:$0xff]   ;;  %s725_s12 = sshll.u32 %s1074_s11, 4  ;;  %s726_s12 = int_to_ptr.vmem [resolvable:$true] %s725_s12 }
  0x16   :  { %848 = vmatpush3.bf16.msra.mxu0 %v973_v1  ;;  %868 = vmatpush3.bf16.msra.mxu1 %v981_v4  ;;  %v978_v9 = vld [vmem:[#allocation2 + $0x28] sm:$0xff]   ;;  %v984_v10 = vld [vmem:[#allocation2 + $0x58] sm:$0xff]   ;;  %v979_v11 = vld [vmem:[#allocation2 + $0x30] sm:$0xff]   ;;  %s1043_s13 = scalar_lea.vmem %s726_s12, 128  ;;  %p1048_p9 = scmp.lt.s32.totalorder %s726_s12, %s726_s12 }
  0x17   :  { %849 = vmatprep.subr.bf16.mxu0 %v1072_v0  ;;  %869 = vmatprep.subr.bf16.mxu1 %v1072_v0  ;;  %v985_v12 = vld [vmem:[#allocation2 + $0x60] sm:$0xff]   ;;  %v980_v13 = vld [vmem:[#allocation2 + $0x38] sm:$0xff]   ;;  %v986_v15 = vld [vmem:[#allocation2 + $0x68] sm:$0xff]   ;;  %p1044_p8 = scmp.ne.s32.totalorder %s726_s12, %s1043_s13  ;;  %p1049_p10 = scmp.lt.s32.totalorder %s1043_s13, %s1043_s13 }
  0x18   :  { %v30_v14 = vld [vmem:[%s1200_s0] sm:$0xff]  ;;  %v987_v17 = vld [vmem:[#allocation2 + $0x70] sm:$0xff]   ;;  %v988_v18 = vld [vmem:[#allocation2 + $0x78] sm:$0xff]  }
  0x19   :  { %v48_v16 = vpack.c.bf16 %v30_v14, %v30_v14  ;;  %v989_v19 = vld [vmem:[#allocation2 + $0x80] sm:$0xff]   ;;  %v990_v20 = vld [vmem:[#allocation2 + $0x88] sm:$0xff]   ;;  %v991_v21 = vld [vmem:[#allocation2 + $0x90] sm:$0xff]   ;;  %p1050_p11 = por %p1049_p10, %p1048_p9 }
  0x1a   :  { %850 = vmatpush3.bf16.msra.mxu0 %v974_v2  ;;  %870 = vmatpush3.bf16.msra.mxu1 %v982_v6  ;;  %v992_v22 = vld [vmem:[#allocation2 + $0x98] sm:$0xff]   ;;  %v993_v23 = vld [vmem:[#allocation2 + $0xa0] sm:$0xff]   ;;  %v994_v24 = vld [vmem:[#allocation2 + $0xa8] sm:$0xff]  }
  0x1b   :  { %851 = vmatprep.subr.bf16.mxu0 %v1072_v0  ;;  %871 = vmatprep.subr.bf16.mxu1 %v1072_v0  ;;  %v734_v25 = vld [vmem:[%s1202_s2] ss:$0 sm:$0xff]  ;;  %v995_v33 = vld [vmem:[#allocation2 + $0xb0] sm:$0xff]   ;;  %v996_v34 = vld [vmem:[#allocation2 + $0xb8] sm:$0xff]   ;;  %p1051_p12 = pnand %p1050_p11, %p1044_p8 }
  0x1c   :  { %v997_v35 = vld [vmem:[#allocation2 + $0xc0] sm:$0xff]   ;;  %v998_v36 = vld [vmem:[#allocation2 + $0xc8] sm:$0xff]   ;;  %v999_v37 = vld [vmem:[#allocation2 + $0xd0] sm:$0xff]  }
  0x1d   :  { %v1000_v38 = vld [vmem:[#allocation2 + $0xd8] sm:$0xff]   ;;  %v1001_v39 = vld [vmem:[#allocation2 + $0xe0] sm:$0xff]   ;;  %v1002_v40 = vld [vmem:[#allocation2 + $0xe8] sm:$0xff]  }
  0x1e   :  { %852 = vmatpush3.bf16.msra.mxu0 %v975_v3  ;;  %872 = vmatpush3.bf16.msra.mxu1 %v983_v8  ;;  %v744_v41 = vld [vmem:[%s1202_s2 + $0x1] ss:$0 sm:$0xff]  ;;  %v1003_v49 = vld [vmem:[#allocation2 + $0xf0] sm:$0xff]   ;;  %v1004_v50 = vld [vmem:[#allocation2 + $0xf8] sm:$0xff]  }
  0x1f   :  { %853 = vmatprep.subr.bf16.mxu0 %v1072_v0  ;;  %873 = vmatprep.subr.bf16.mxu1 %v1072_v0  ;;  %v1005_v51 = vld [vmem:[#allocation2 + $0x100] sm:$0xff]   ;;  %v1006_v52 = vld [vmem:[#allocation2 + $0x108] sm:$0xff]   ;;  %v1007_v53 = vld [vmem:[#allocation2 + $0x110] sm:$0xff]  }
  0x20   :  { %v1008_v54 = vld [vmem:[#allocation2 + $0x118] sm:$0xff]   ;;  %v1009_v55 = vld [vmem:[#allocation2 + $0x120] sm:$0xff]   ;;  %v1010_v56 = vld [vmem:[#allocation2 + $0x128] sm:$0xff]  }
  0x21   :  { %v754_v57 = vld [vmem:[%s1202_s2 + $0x2] ss:$0 sm:$0xff]  ;;  %v1011_v2 = vld [vmem:[#allocation2 + $0x130] sm:$0xff]   ;;  %v1012_v3 = vld [vmem:[#allocation2 + $0x138] sm:$0xff]  }
  0x22   :  { %854 = vmatpush3.bf16.msra.mxu0 %v976_v5  ;;  %874 = vmatpush3.bf16.msra.mxu1 %v984_v10  ;;  %v1013_v4 = vld [vmem:[#allocation2 + $0x140] sm:$0xff]   ;;  %v1014_v5 = vld [vmem:[#allocation2 + $0x148] sm:$0xff]   ;;  %v1015_v6 = vld [vmem:[#allocation2 + $0x150] sm:$0xff]  }
  0x23   :  { %855 = vmatprep.subr.bf16.mxu0 %v1072_v0  ;;  %875 = vmatprep.subr.bf16.mxu1 %v1072_v0  ;;  %v1017_v8 = vld [vmem:[#allocation2 + $0x160] sm:$0xff]  }
  0x24   :  { %v764_v10 = vld [vmem:[%s1202_s2 + $0x3] ss:$0 sm:$0xff] }
  0x26   :  { %856 = vmatpush3.bf16.msra.mxu0 %v977_v7  ;;  %876 = vmatpush3.bf16.msra.mxu1 %v985_v12  ;;  %v1016_v7 = vld [vmem:[#allocation2 + $0x158] sm:$0xff]  }
  0x27   :  { %857 = vmatprep.subr.bf16.mxu0 %v1072_v0  ;;  %877 = vmatprep.subr.bf16.mxu1 %v1072_v0 }
  0x2a   :  { %858 = vmatpush3.bf16.msra.mxu0 %v978_v9  ;;  %878 = vmatpush3.bf16.msra.mxu1 %v986_v15  ;;  %v1018_v9 = vld [vmem:[#allocation2 + $0x168] sm:$0xff]  }
  0x2b   :  { %859 = vmatprep.subr.bf16.mxu0 %v1072_v0  ;;  %879 = vmatprep.subr.bf16.mxu1 %v1072_v0 }
  0x2e   :  { %860 = vmatpush3.bf16.msra.mxu0 %v979_v11  ;;  %880 = vmatpush3.bf16.msra.mxu1 %v987_v17 }
  0x2f   :  { %861 = vmatprep.subr.bf16.mxu0 %v1072_v0  ;;  %881 = vmatprep.subr.bf16.mxu1 %v1072_v0 }
  0x32   :  { %862 = vmatpush3.bf16.msra.mxu0 %v980_v13  ;;  %882 = vmatpush3.bf16.msra.mxu1 %v988_v18  ;;  %v1019_v18 = vld [vmem:[#allocation2 + $0x170] sm:$0xff]  }
  0x33   :  { %887 = vmatprep.subr.bf16.mxu0 %v1072_v0  ;;  %907 = vmatprep.subr.bf16.mxu1 %v1072_v0 }
  0x35   :  { %864 = vmatmul.mubr.bf16.vlgmr.msra.gmra.mrb[0].mxu0 %v48_v16 }
  0x36   :  { %903 = vmatprep.mubr.msk.bf16.mxu0 %vm1073_vm0, %v1072_v0  ;;  %888 = vmatpush3.bf16.msra.mxu0 %v989_v19  ;;  %v1020_v19 = vld [vmem:[#allocation2 + $0x178] sm:$0xff]  }
  0x37   :  { %889 = vmatprep.subr.bf16.mxu0 %v1072_v0 }
  0x3a   :  { %890 = vmatpush3.bf16.msra.mxu0 %v990_v20  ;;  %v774_v20 = vld [vmem:[%s1202_s2 + $0x4] ss:$0 sm:$0xff] }
  0x3b   :  { %891 = vmatprep.subr.bf16.mxu0 %v1072_v0 }
  0x3e   :  { %892 = vmatpush3.bf16.msra.mxu0 %v991_v21 }
  0x3f   :  { %893 = vmatprep.subr.bf16.mxu0 %v1072_v0 }
  0x42   :  { %894 = vmatpush3.bf16.msra.mxu0 %v992_v22 }
  0x43   :  { %895 = vmatprep.subr.bf16.mxu0 %v1072_v0 }
  0x46   :  { %896 = vmatpush3.bf16.msra.mxu0 %v993_v23 }
  0x47   :  { %897 = vmatprep.subr.bf16.mxu0 %v1072_v0 }
  0x4a   :  { %898 = vmatpush3.bf16.msra.mxu0 %v994_v24 }
  0x4b   :  { %899 = vmatprep.subr.bf16.mxu0 %v1072_v0 }
  0x4e   :  { %900 = vmatpush3.bf16.msra.mxu0 %v995_v33 }
  0x4f   :  { %901 = vmatprep.subr.bf16.mxu0 %v1072_v0 }
  0x52   :  { %902 = vmatpush3.bf16.msra.mxu0 %v996_v34 }
  0x53   :  { %927 = vmatprep.subr.bf16.mxu0 %v1072_v0 }
 0x108   :  { %v137_v26 = vpop.f32.mrb[0].mxu0 }
 0x109   :  { %v138_v27 = vadd.f32 %v734_v25, %v137_v26  ;;  %v865_v28 = vpop.f32.mrb[1].mxu0 }
 0x10a   :  { %v140_v29 = vpop.f32.mrb[2].mxu0  ;;  %v784_v28 = vld [vmem:[%s1202_s2 + $0x5] ss:$0 sm:$0xff] }
 0x10b   :  { %v143_v30 = vmax.f32 %v138_v27, 0.0  ;;  %v866_v31 = vpop.f32.mrb[3].mxu0 }
 0x10d   :  { %v163_v32 = vpack.c.bf16 %v143_v30, %v143_v30 }
 0x10f   :  { %884 = vmatmul.mubr.bf16.vlgmr.msra.gmra.mrb[0].mxu1 %v163_v32 }
 0x110   :  { %923 = vmatprep.mubr.msk.bf16.mxu1 %vm1073_vm0, %v1072_v0  ;;  %908 = vmatpush3.bf16.msra.mxu1 %v997_v35 }
 0x111   :  { %909 = vmatprep.subr.bf16.mxu1 %v1072_v0 }
 0x114   :  { %910 = vmatpush3.bf16.msra.mxu1 %v998_v36 }
 0x115   :  { %911 = vmatprep.subr.bf16.mxu1 %v1072_v0 }
 0x118   :  { %912 = vmatpush3.bf16.msra.mxu1 %v999_v37 }
 0x119   :  { %913 = vmatprep.subr.bf16.mxu1 %v1072_v0 }
 0x11c   :  { %914 = vmatpush3.bf16.msra.mxu1 %v1000_v38 }
 0x11d   :  { %915 = vmatprep.subr.bf16.mxu1 %v1072_v0 }
 0x120   :  { %916 = vmatpush3.bf16.msra.mxu1 %v1001_v39 }
 0x121   :  { %917 = vmatprep.subr.bf16.mxu1 %v1072_v0 }
 0x124   :  { %918 = vmatpush3.bf16.msra.mxu1 %v1002_v40 }
 0x125   :  { %919 = vmatprep.subr.bf16.mxu1 %v1072_v0 }
 0x128   :  { %920 = vmatpush3.bf16.msra.mxu1 %v1003_v49 }
 0x129   :  { %921 = vmatprep.subr.bf16.mxu1 %v1072_v0 }
 0x12c   :  { %922 = vmatpush3.bf16.msra.mxu1 %v1004_v50 }
 0x12d   :  { %947 = vmatprep.subr.bf16.mxu1 %v1072_v0 }
 0x1e2   :  { %v252_v42 = vpop.f32.mrb[0].mxu1 }
 0x1e3   :  { %v253_v43 = vadd.f32 %v744_v41, %v252_v42  ;;  %v885_v44 = vpop.f32.mrb[1].mxu1 }
 0x1e4   :  { %v255_v45 = vpop.f32.mrb[2].mxu1 }
 0x1e5   :  { %v258_v46 = vmax.f32 %v253_v43, 0.0  ;;  %v886_v47 = vpop.f32.mrb[3].mxu1 }
 0x1e7   :  { %v278_v48 = vpack.c.bf16 %v258_v46, %v258_v46 }
 0x1e9   :  { %904 = vmatmul.mubr.bf16.vlgmr.msra.gmra.mrb[4].mxu0 %v278_v48 }
 0x1ea   :  { %943 = vmatprep.mubr.msk.bf16.mxu0 %vm1073_vm0, %v1072_v0  ;;  %928 = vmatpush3.bf16.msra.mxu0 %v1005_v51 }
 0x1eb   :  { %929 = vmatprep.subr.bf16.mxu0 %v1072_v0 }
 0x1ee   :  { %930 = vmatpush3.bf16.msra.mxu0 %v1006_v52 }
 0x1ef   :  { %931 = vmatprep.subr.bf16.mxu0 %v1072_v0 }
 0x1f2   :  { %932 = vmatpush3.bf16.msra.mxu0 %v1007_v53 }
 0x1f3   :  { %933 = vmatprep.subr.bf16.mxu0 %v1072_v0 }
 0x1f6   :  { %934 = vmatpush3.bf16.msra.mxu0 %v1008_v54 }
 0x1f7   :  { %935 = vmatprep.subr.bf16.mxu0 %v1072_v0 }
 0x1fa   :  { %936 = vmatpush3.bf16.msra.mxu0 %v1009_v55 }
 0x1fb   :  { %937 = vmatprep.subr.bf16.mxu0 %v1072_v0 }
 0x1fe   :  { %938 = vmatpush3.bf16.msra.mxu0 %v1010_v56 }
 0x1ff   :  { %939 = vmatprep.subr.bf16.mxu0 %v1072_v0 }
 0x202   :  { %940 = vmatpush3.bf16.msra.mxu0 %v1011_v2 }
 0x203   :  { %941 = vmatprep.subr.bf16.mxu0 %v1072_v0 }
 0x206   :  { %942 = vmatpush3.bf16.msra.mxu0 %v1012_v3 }
 0x2bc   :  { %v367_v58 = vpop.f32.mrb[4].mxu0 }
 0x2bd   :  { %v368_v59 = vadd.f32 %v754_v57, %v367_v58  ;;  %v905_v60 = vpop.f32.mrb[5].mxu0 }
 0x2be   :  { %v370_v61 = vpop.f32.mrb[6].mxu0 }
 0x2bf   :  { %v373_v62 = vmax.f32 %v368_v59, 0.0  ;;  %v906_v63 = vpop.f32.mrb[7].mxu0 }
 0x2c1   :  { %v393_v1 = vpack.c.bf16 %v373_v62, %v373_v62 }
 0x2c3   :  { %924 = vmatmul.mubr.bf16.vlgmr.msra.gmra.mrb[4].mxu1 %v393_v1 }
 0x2c4   :  { %963 = vmatprep.mubr.msk.bf16.mxu1 %vm1073_vm0, %v1072_v0  ;;  %948 = vmatpush3.bf16.msra.mxu1 %v1013_v4 }
 0x2c5   :  { %949 = vmatprep.subr.bf16.mxu1 %v1072_v0 }
 0x2c8   :  { %950 = vmatpush3.bf16.msra.mxu1 %v1014_v5 }
 0x2c9   :  { %951 = vmatprep.subr.bf16.mxu1 %v1072_v0 }
 0x2cc   :  { %952 = vmatpush3.bf16.msra.mxu1 %v1015_v6 }
 0x2cd   :  { %953 = vmatprep.subr.bf16.mxu1 %v1072_v0 }
 0x2d0   :  { %954 = vmatpush3.bf16.msra.mxu1 %v1016_v7 }
 0x2d1   :  { %955 = vmatprep.subr.bf16.mxu1 %v1072_v0 }
 0x2d4   :  { %956 = vmatpush3.bf16.msra.mxu1 %v1017_v8 }
 0x2d5   :  { %957 = vmatprep.subr.bf16.mxu1 %v1072_v0 }
 0x2d8   :  { %958 = vmatpush3.bf16.msra.mxu1 %v1018_v9 }
 0x2d9   :  { %959 = vmatprep.subr.bf16.mxu1 %v1072_v0 }
 0x2dc   :  { %960 = vmatpush3.bf16.msra.mxu1 %v1019_v18 }
 0x2dd   :  { %961 = vmatprep.subr.bf16.mxu1 %v1072_v0 }
 0x2e0   :  { %962 = vmatpush3.bf16.msra.mxu1 %v1020_v19 }
 0x396   :  { %v482_v11 = vpop.f32.mrb[4].mxu1 }
 0x397   :  { %v483_v12 = vadd.f32 %v764_v10, %v482_v11  ;;  %v925_v13 = vpop.f32.mrb[5].mxu1 }
 0x398   :  { %v485_v14 = vpop.f32.mrb[6].mxu1 }
 0x399   :  { %v488_v15 = vmax.f32 %v483_v12, 0.0  ;;  %v926_v16 = vpop.f32.mrb[7].mxu1 }
 0x39b   :  { %v508_v17 = vpack.c.bf16 %v488_v15, %v488_v15 }
 0x39d   :  { %944 = vmatmul.mubr.bf16.vlgmr.msra.gmra.mrb[8].mxu0 %v508_v17 }
 0x470   :  { %v597_v21 = vpop.f32.mrb[8].mxu0 }
 0x471   :  { %v598_v22 = vadd.f32 %v774_v20, %v597_v21  ;;  %v945_v23 = vpop.f32.mrb[9].mxu0 }
 0x472   :  { %v600_v24 = vpop.f32.mrb[10].mxu0 }
 0x473   :  { %v603_v25 = vmax.f32 %v598_v22, 0.0  ;;  %v946_v26 = vpop.f32.mrb[11].mxu0 }
 0x475   :  { %v623_v27 = vpack.c.bf16 %v603_v25, %v603_v25 }
 0x477   :  { %964 = vmatmul.mubr.bf16.vlgmr.msra.gmra.mrb[8].mxu1 %v623_v27 }
 0x54a   :  { %v712_v0 = vpop.f32.mrb[8].mxu1 }
 0x54b   :  { %v713_v29 = vadd.f32 %v784_v28, %v712_v0  ;;  %v965_v30 = vpop.f32.mrb[9].mxu1 }
 0x54c   :  { %v715_v31 = vpop.f32.mrb[10].mxu1 }
 0x54d   :  { %718 = vst [vmem:[#allocation5] sm:$0xff] %v713_v29  ;;  %v966_v32 = vpop.f32.mrb[11].mxu1 }
 0x54e   :  { %1054 = shalt.err (!%p1051_p12)
}
 0x54f   :  { %s1055_s2 = scalar_lea.hbm %s1203_s3, 128 }
 0x550   :  { %p1056_p13 = scmp.ne.s32.totalorder %s1203_s3, %s1055_s2  ;;  %p1059_p0 = scmp.lt.u32.totalorder %s1055_s2, %s1203_s3 }
 0x552   :  { %p1061_p1 = pnand %p1059_p0, %p1056_p13 }
 0x554   :  { %1064 = shalt.err (!%p1061_p1)
}
 0x555   :  { %728 = dma.vmem_to_hbm [thread:$0]  %s726_s12, 128, %s1203_s3, [#allocation4]  }
 0x556   :  { %1067 = dma.done.wait [#allocation4], 128  }
 0x557   :  { %1068 = vsyncadd [#allocation4], 4294967168 }
 0x558   :  { %732 = vsyncpa [#allocation3], 1 }
 0x559   :  { %733 = vsyncpa [#allocation4], 1 }

</bundles_post_ra>
